<compile_context>
chip_gen: v7x
topology: tpu7x:2x2x1
jax: 0.10.0
libtpu: 0.0.40
codegen_flags: <defaults>
</compile_context>

<pallas_src>
import functools

import jax
import jax.numpy as jnp
from jax.experimental import pallas as pl
from jax.experimental.pallas import tpu as pltpu

LANE = 128          # lane / MXU N,K alignment
SUBLANE_BF16 = 16   # bf16 sublane packing (rows)
TB_LARGE = 256      # batch tile for the streaming (large-B) regime


def _round_up(n, m):
    return ((n + m - 1) // m) * m


def _mlp_kernel(x_ref,
                w1_ref, b1_ref, w2_ref, b2_ref, w3_ref, b3_ref,
                w4_ref, b4_ref, w5_ref, b5_ref, w6_ref, b6_ref,
                o_ref):
    """One (TB, in_pad) f32 batch tile through all 6 layers.

    Matmul operands bf16, accumulation f32 (preferred_element_type); bias add and
    ReLU run in f32 on the VPU (safe on v5e, which has no bf16 VPU).
    """
    def layer(h_bf16, w_ref, b_ref, relu):
        y = jnp.dot(h_bf16, w_ref[...], preferred_element_type=jnp.float32)
        y = y + b_ref[...]
        if relu:
            return jnp.maximum(y, 0.0).astype(jnp.bfloat16)
        return y

    h = x_ref[...].astype(jnp.bfloat16)        # f32 HBM read, cast hides under MXU
    h = layer(h, w1_ref, b1_ref, True)
    h = layer(h, w2_ref, b2_ref, True)
    h = layer(h, w3_ref, b3_ref, True)
    h = layer(h, w4_ref, b4_ref, True)
    h = layer(h, w5_ref, b5_ref, True)
    out = layer(h, w6_ref, b6_ref, False)      # f32, no ReLU
    o_ref[...] = out.astype(o_ref.dtype)


def prepare_params(params):
    """One-time (load-time) pad + cast of the 6 (W^T, b) pairs.

    params: list of (W_t (fan_in, fan_out) f32, b (1, fan_out) f32), application
    order. Returns (flat_padded_args_tuple, dim_in, dim_out). Padding is zeros, so
    padded weight rows/cols contribute nothing to real outputs.
    """
    assert len(params) == 6, "PretrainedBadMLP has exactly 6 linear layers"
    dim_in = params[0][0].shape[0]
    dim_out = params[-1][0].shape[1]
    prev_pad = _round_up(dim_in, LANE)
    flat = []
    for (w_t, bvec) in params:
        fi, fo = w_t.shape
        fo_pad = _round_up(fo, LANE)
        w_p = jnp.zeros((prev_pad, fo_pad), jnp.bfloat16)
        w_p = w_p.at[:fi, :fo].set(w_t.astype(jnp.bfloat16))
        b_p = jnp.zeros((1, fo_pad), jnp.float32)
        b_p = b_p.at[:, :fo].set(bvec.reshape(1, fo).astype(jnp.float32))
        flat.append(w_p)
        flat.append(b_p)
        prev_pad = fo_pad
    flat = tuple(jax.block_until_ready(a) for a in flat)
    return flat, dim_in, dim_out


@functools.partial(jax.jit, static_argnums=(2,))
def _forward_impl(x2d, flat_params, dim_out):
    B, dim_in = x2d.shape
    in_pad = flat_params[0].shape[0]     # padded dim_in (rows of W1)
    out_pad = flat_params[-2].shape[1]   # padded dim_out (cols of W6)

    # Batch tiling: tiny batches -> one (round_up(B,16))-row block (no 128-row
    # padding waste); large batches -> 256-row tiles (>=2 grid steps so the
    # "parallel" axis can shard across both v7x TensorCores).
    if B <= TB_LARGE:
        tb = _round_up(B, SUBLANE_BF16)
    else:
        tb = TB_LARGE
    b_pad = _round_up(B, tb)

    # Zero-pad the f32 activations only when needed — no bf16 HBM copy; the
    # kernel casts to bf16 in-register before the first dot.
    if (b_pad, in_pad) != (B, dim_in):
        x_p = jnp.zeros((b_pad, in_pad), x2d.dtype).at[:B, :dim_in].set(x2d)
    else:
        x_p = x2d

    # Specs: batch-tiled activations; VMEM-resident weights/biases (constant
    # index_map, never re-DMA'd). Default buffering kept on the resident blocks:
    # the extra buffer is ~0.8 MiB — negligible vs VMEM on v5e/v6e/v7x.
    in_specs = [pl.BlockSpec((tb, in_pad), lambda i: (i, 0))]
    for a in flat_params:
        in_specs.append(pl.BlockSpec(a.shape, lambda i: (0, 0)))
    out_specs = pl.BlockSpec((tb, out_pad), lambda i: (i, 0))

    # Advisory cost estimate for XLA's scheduler.
    flops = 0
    bytes_accessed = x_p.size * 4 + b_pad * out_pad * 4
    for w_p, b_p in zip(flat_params[0::2], flat_params[1::2]):
        flops += 2 * b_pad * w_p.shape[0] * w_p.shape[1]
        bytes_accessed += w_p.size * 2 + b_p.size * 4

    out_padded = pl.pallas_call(
        _mlp_kernel,
        out_shape=jax.ShapeDtypeStruct((b_pad, out_pad), jnp.float32),
        grid=(b_pad // tb,),
        in_specs=in_specs,
        out_specs=out_specs,
        compiler_params=pltpu.CompilerParams(
            dimension_semantics=("parallel",)),
        cost_estimate=pl.CostEstimate(
            flops=flops, transcendentals=0, bytes_accessed=bytes_accessed),
    )(x_p, *flat_params)

    return out_padded[:B, :dim_out]


def pretrained_bad_mlp_forward(x, prepared):
    """x: (B, C, H, W) float32. prepared: output of prepare_params()."""
    flat_params, dim_in, dim_out = prepared
    B = x.shape[0]
    x2d = x.reshape(B, -1)               # same flatten as torch .view(-1, C*H*W)
    assert x2d.shape[1] == dim_in
    return _forward_impl(x2d, flat_params, dim_out)


def init_params(key, dims):
    """PyTorch-style Linear init: U(-1/sqrt(fan_in), 1/sqrt(fan_in)).

    dims = [dim_in, h1, h2, h3, h4, h5, dim_out].
    Returns list of (W_transposed (in, out), bias (1, out)) per layer.
    """
    params = []
    for i in range(len(dims) - 1):
        fan_in, fan_out = dims[i], dims[i + 1]
        key, kw, kb = jax.random.split(key, 3)
        bound = 1.0 / jnp.sqrt(fan_in)
        w = jax.random.uniform(kw, (fan_out, fan_in), jnp.float32, -bound, bound)
        b = jax.random.uniform(kb, (fan_out,), jnp.float32, -bound, bound)
        params.append((w.T, b.reshape(1, fan_out)))
    return params


if __name__ == "__main__":
    key = jax.random.PRNGKey(0)

    # Small shapes consistent with forward(): NCHW input flattened to C*H*W.
    B, C, H, W = 2, 4, 16, 16
    dim_in = C * H * W                      # 1024
    dims = [dim_in, 256, 256, 128, 128, 64, 10]

    key, kx = jax.random.split(key)
    x = jax.random.normal(kx, (B, C, H, W), jnp.float32)
    raw_params = init_params(key, dims)

    # One-time pad + bf16 cast, hoisted out of the per-call path.
    prepared = prepare_params(raw_params)

    out = pretrained_bad_mlp_forward(x, prepared)
    out = jax.block_until_ready(out)
    assert out.shape == (B, dims[-1])

    # Reference with the same bf16-operand / f32-accumulate numerics.
    h = x.reshape(B, dim_in)
    for i, (w_t, b) in enumerate(raw_params):
        y = jnp.dot(h.astype(jnp.bfloat16), w_t.astype(jnp.bfloat16),
                    preferred_element_type=jnp.float32) + b
        h = jnp.maximum(y, 0.0) if i < len(raw_params) - 1 else y
    assert jnp.allclose(out, h, atol=2e-2, rtol=2e-2), \
        float(jnp.max(jnp.abs(out - h)))

    print("KERNEL_OK")
</pallas_src>

<mosaic_0001>
module attributes {stable_mosaic.version = 11 : i64} {
  func.func @_mlp_kernel(%arg0: i32, %arg1: memref<16x1024xf32, #tpu.memory_space<vmem>>, %arg2: memref<1024x256xbf16, #tpu.memory_space<vmem>>, %arg3: memref<1x256xf32, #tpu.memory_space<vmem>>, %arg4: memref<256x256xbf16, #tpu.memory_space<vmem>>, %arg5: memref<1x256xf32, #tpu.memory_space<vmem>>, %arg6: memref<256x128xbf16, #tpu.memory_space<vmem>>, %arg7: memref<1x128xf32, #tpu.memory_space<vmem>>, %arg8: memref<128x128xbf16, #tpu.memory_space<vmem>>, %arg9: memref<1x128xf32, #tpu.memory_space<vmem>>, %arg10: memref<128x128xbf16, #tpu.memory_space<vmem>>, %arg11: memref<1x128xf32, #tpu.memory_space<vmem>>, %arg12: memref<128x128xbf16, #tpu.memory_space<vmem>>, %arg13: memref<1x128xf32, #tpu.memory_space<vmem>>, %arg14: memref<16x128xf32, #tpu.memory_space<vmem>>) attributes {dimension_semantics = [#tpu.dimension_semantics<parallel>], iteration_bounds = array<i64: 1>, scalar_prefetch = 0 : i64, scratch_operands = 0 : i64, tpu.core_type = #tpu.core_type<tc>, window_params = [{transform_indices = @transform_0, window_bounds = array<i64: 16, 1024>}, {pipeline_mode = #tpu.pipeline_mode<synchronous>, transform_indices = @transform_1, window_bounds = array<i64: 1024, 256>}, {pipeline_mode = #tpu.pipeline_mode<synchronous>, transform_indices = @transform_2, window_bounds = array<i64: 1, 256>}, {pipeline_mode = #tpu.pipeline_mode<synchronous>, transform_indices = @transform_3, window_bounds = array<i64: 256, 256>}, {pipeline_mode = #tpu.pipeline_mode<synchronous>, transform_indices = @transform_4, window_bounds = array<i64: 1, 256>}, {pipeline_mode = #tpu.pipeline_mode<synchronous>, transform_indices = @transform_5, window_bounds = array<i64: 256, 128>}, {pipeline_mode = #tpu.pipeline_mode<synchronous>, transform_indices = @transform_6, window_bounds = array<i64: 1, 128>}, {pipeline_mode = #tpu.pipeline_mode<synchronous>, transform_indices = @transform_7, window_bounds = array<i64: 128, 128>}, {pipeline_mode = #tpu.pipeline_mode<synchronous>, transform_indices = @transform_8, window_bounds = array<i64: 1, 128>}, {pipeline_mode = #tpu.pipeline_mode<synchronous>, transform_indices = @transform_9, window_bounds = array<i64: 128, 128>}, {pipeline_mode = #tpu.pipeline_mode<synchronous>, transform_indices = @transform_10, window_bounds = array<i64: 1, 128>}, {pipeline_mode = #tpu.pipeline_mode<synchronous>, transform_indices = @transform_11, window_bounds = array<i64: 128, 128>}, {pipeline_mode = #tpu.pipeline_mode<synchronous>, transform_indices = @transform_12, window_bounds = array<i64: 1, 128>}, {transform_indices = @transform_13, window_bounds = array<i64: 16, 128>}]} {
    %c0 = arith.constant 0 : index
    %c0_0 = arith.constant 0 : index
    %0 = vector.load %arg1[%c0, %c0_0] : memref<16x1024xf32, #tpu.memory_space<vmem>>, vector<16x1024xf32>
    %1 = arith.truncf %0 : vector<16x1024xf32> to vector<16x1024xbf16>
    %c0_1 = arith.constant 0 : index
    %c0_2 = arith.constant 0 : index
    %2 = vector.load %arg2[%c0_1, %c0_2] : memref<1024x256xbf16, #tpu.memory_space<vmem>>, vector<1024x256xbf16>
    %cst = arith.constant dense<0.000000e+00> : vector<16x256xf32>
    %3 = tpu.matmul %1, %2, %cst {dimension_numbers = #tpu.dot_dimension_numbers<[1], [0], [0], [1], [0, 0, 1, 1], [], []>} : vector<16x1024xbf16>, vector<1024x256xbf16>, vector<16x256xf32> -> vector<16x256xf32>
    %c0_3 = arith.constant 0 : index
    %c0_4 = arith.constant 0 : index
    %4 = vector.load %arg3[%c0_3, %c0_4] : memref<1x256xf32, #tpu.memory_space<vmem>>, vector<1x256xf32>
    %5 = vector.broadcast %4 : vector<1x256xf32> to vector<16x256xf32>
    %6 = arith.addf %3, %5 : vector<16x256xf32>
    %cst_5 = arith.constant 0.000000e+00 : f32
    %7 = vector.broadcast %cst_5 : f32 to vector<16x256xf32>
    %8 = arith.maximumf %6, %7 : vector<16x256xf32>
    %9 = arith.truncf %8 : vector<16x256xf32> to vector<16x256xbf16>
    %c0_6 = arith.constant 0 : index
    %c0_7 = arith.constant 0 : index
    %10 = vector.load %arg4[%c0_6, %c0_7] : memref<256x256xbf16, #tpu.memory_space<vmem>>, vector<256x256xbf16>
    %cst_8 = arith.constant dense<0.000000e+00> : vector<16x256xf32>
    %11 = tpu.matmul %9, %10, %cst_8 {dimension_numbers = #tpu.dot_dimension_numbers<[1], [0], [0], [1], [0, 0, 1, 1], [], []>} : vector<16x256xbf16>, vector<256x256xbf16>, vector<16x256xf32> -> vector<16x256xf32>
    %c0_9 = arith.constant 0 : index
    %c0_10 = arith.constant 0 : index
    %12 = vector.load %arg5[%c0_9, %c0_10] : memref<1x256xf32, #tpu.memory_space<vmem>>, vector<1x256xf32>
    %13 = vector.broadcast %12 : vector<1x256xf32> to vector<16x256xf32>
    %14 = arith.addf %11, %13 : vector<16x256xf32>
    %cst_11 = arith.constant 0.000000e+00 : f32
    %15 = vector.broadcast %cst_11 : f32 to vector<16x256xf32>
    %16 = arith.maximumf %14, %15 : vector<16x256xf32>
    %17 = arith.truncf %16 : vector<16x256xf32> to vector<16x256xbf16>
    %c0_12 = arith.constant 0 : index
    %c0_13 = arith.constant 0 : index
    %18 = vector.load %arg6[%c0_12, %c0_13] : memref<256x128xbf16, #tpu.memory_space<vmem>>, vector<256x128xbf16>
    %cst_14 = arith.constant dense<0.000000e+00> : vector<16x128xf32>
    %19 = tpu.matmul %17, %18, %cst_14 {dimension_numbers = #tpu.dot_dimension_numbers<[1], [0], [0], [1], [0, 0, 1, 1], [], []>} : vector<16x256xbf16>, vector<256x128xbf16>, vector<16x128xf32> -> vector<16x128xf32>
    %c0_15 = arith.constant 0 : index
    %c0_16 = arith.constant 0 : index
    %20 = vector.load %arg7[%c0_15, %c0_16] : memref<1x128xf32, #tpu.memory_space<vmem>>, vector<1x128xf32>
    %21 = vector.broadcast %20 : vector<1x128xf32> to vector<16x128xf32>
    %22 = arith.addf %19, %21 : vector<16x128xf32>
    %cst_17 = arith.constant 0.000000e+00 : f32
    %23 = vector.broadcast %cst_17 : f32 to vector<16x128xf32>
    %24 = arith.maximumf %22, %23 : vector<16x128xf32>
    %25 = arith.truncf %24 : vector<16x128xf32> to vector<16x128xbf16>
    %c0_18 = arith.constant 0 : index
    %c0_19 = arith.constant 0 : index
    %26 = vector.load %arg8[%c0_18, %c0_19] : memref<128x128xbf16, #tpu.memory_space<vmem>>, vector<128x128xbf16>
    %cst_20 = arith.constant dense<0.000000e+00> : vector<16x128xf32>
    %27 = tpu.matmul %25, %26, %cst_20 {dimension_numbers = #tpu.dot_dimension_numbers<[1], [0], [0], [1], [0, 0, 1, 1], [], []>} : vector<16x128xbf16>, vector<128x128xbf16>, vector<16x128xf32> -> vector<16x128xf32>
    %c0_21 = arith.constant 0 : index
    %c0_22 = arith.constant 0 : index
    %28 = vector.load %arg9[%c0_21, %c0_22] : memref<1x128xf32, #tpu.memory_space<vmem>>, vector<1x128xf32>
    %29 = vector.broadcast %28 : vector<1x128xf32> to vector<16x128xf32>
    %30 = arith.addf %27, %29 : vector<16x128xf32>
    %cst_23 = arith.constant 0.000000e+00 : f32
    %31 = vector.broadcast %cst_23 : f32 to vector<16x128xf32>
    %32 = arith.maximumf %30, %31 : vector<16x128xf32>
    %33 = arith.truncf %32 : vector<16x128xf32> to vector<16x128xbf16>
    %c0_24 = arith.constant 0 : index
    %c0_25 = arith.constant 0 : index
    %34 = vector.load %arg10[%c0_24, %c0_25] : memref<128x128xbf16, #tpu.memory_space<vmem>>, vector<128x128xbf16>
    %cst_26 = arith.constant dense<0.000000e+00> : vector<16x128xf32>
    %35 = tpu.matmul %33, %34, %cst_26 {dimension_numbers = #tpu.dot_dimension_numbers<[1], [0], [0], [1], [0, 0, 1, 1], [], []>} : vector<16x128xbf16>, vector<128x128xbf16>, vector<16x128xf32> -> vector<16x128xf32>
    %c0_27 = arith.constant 0 : index
    %c0_28 = arith.constant 0 : index
    %36 = vector.load %arg11[%c0_27, %c0_28] : memref<1x128xf32, #tpu.memory_space<vmem>>, vector<1x128xf32>
    %37 = vector.broadcast %36 : vector<1x128xf32> to vector<16x128xf32>
    %38 = arith.addf %35, %37 : vector<16x128xf32>
    %cst_29 = arith.constant 0.000000e+00 : f32
    %39 = vector.broadcast %cst_29 : f32 to vector<16x128xf32>
    %40 = arith.maximumf %38, %39 : vector<16x128xf32>
    %41 = arith.truncf %40 : vector<16x128xf32> to vector<16x128xbf16>
    %c0_30 = arith.constant 0 : index
    %c0_31 = arith.constant 0 : index
    %42 = vector.load %arg12[%c0_30, %c0_31] : memref<128x128xbf16, #tpu.memory_space<vmem>>, vector<128x128xbf16>
    %cst_32 = arith.constant dense<0.000000e+00> : vector<16x128xf32>
    %43 = tpu.matmul %41, %42, %cst_32 {dimension_numbers = #tpu.dot_dimension_numbers<[1], [0], [0], [1], [0, 0, 1, 1], [], []>} : vector<16x128xbf16>, vector<128x128xbf16>, vector<16x128xf32> -> vector<16x128xf32>
    %c0_33 = arith.constant 0 : index
    %c0_34 = arith.constant 0 : index
    %44 = vector.load %arg13[%c0_33, %c0_34] : memref<1x128xf32, #tpu.memory_space<vmem>>, vector<1x128xf32>
    %45 = vector.broadcast %44 : vector<1x128xf32> to vector<16x128xf32>
    %46 = arith.addf %43, %45 : vector<16x128xf32>
    %c0_35 = arith.constant 0 : index
    %c0_36 = arith.constant 0 : index
    %47 = vector.load %arg14[%c0_35, %c0_36] : memref<16x128xf32, #tpu.memory_space<vmem>>, vector<16x128xf32>
    tpu.vector_store %arg14[%c0_35, %c0_36], %46 {strides = array<i32>} : memref<16x128xf32, #tpu.memory_space<vmem>>, vector<16x128xf32>,
    return
  }
  func.func @transform_0(%arg0: i32) -> (i32, i32) {
    %c0_i32 = arith.constant 0 : i32
    %c0_i32_0 = arith.constant 0 : i32
    return %arg0, %c0_i32 : i32, i32
  }
  func.func @transform_1(%arg0: i32) -> (i32, i32) {
    %c0_i32 = arith.constant 0 : i32
    %c0_i32_0 = arith.constant 0 : i32
    %c0_i32_1 = arith.constant 0 : i32
    return %c0_i32, %c0_i32_0 : i32, i32
  }
  func.func @transform_2(%arg0: i32) -> (i32, i32) {
    %c0_i32 = arith.constant 0 : i32
    %c0_i32_0 = arith.constant 0 : i32
    %c0_i32_1 = arith.constant 0 : i32
    return %c0_i32, %c0_i32_0 : i32, i32
  }
  func.func @transform_3(%arg0: i32) -> (i32, i32) {
    %c0_i32 = arith.constant 0 : i32
    %c0_i32_0 = arith.constant 0 : i32
    %c0_i32_1 = arith.constant 0 : i32
    return %c0_i32, %c0_i32_0 : i32, i32
  }
  func.func @transform_4(%arg0: i32) -> (i32, i32) {
    %c0_i32 = arith.constant 0 : i32
    %c0_i32_0 = arith.constant 0 : i32
    %c0_i32_1 = arith.constant 0 : i32
    return %c0_i32, %c0_i32_0 : i32, i32
  }
  func.func @transform_5(%arg0: i32) -> (i32, i32) {
    %c0_i32 = arith.constant 0 : i32
    %c0_i32_0 = arith.constant 0 : i32
    %c0_i32_1 = arith.constant 0 : i32
    return %c0_i32, %c0_i32_0 : i32, i32
  }
  func.func @transform_6(%arg0: i32) -> (i32, i32) {
    %c0_i32 = arith.constant 0 : i32
    %c0_i32_0 = arith.constant 0 : i32
    %c0_i32_1 = arith.constant 0 : i32
    return %c0_i32, %c0_i32_0 : i32, i32
  }
  func.func @transform_7(%arg0: i32) -> (i32, i32) {
    %c0_i32 = arith.constant 0 : i32
    %c0_i32_0 = arith.constant 0 : i32
    %c0_i32_1 = arith.constant 0 : i32
    return %c0_i32, %c0_i32_0 : i32, i32
  }
  func.func @transform_8(%arg0: i32) -> (i32, i32) {
    %c0_i32 = arith.constant 0 : i32
    %c0_i32_0 = arith.constant 0 : i32
    %c0_i32_1 = arith.constant 0 : i32
    return %c0_i32, %c0_i32_0 : i32, i32
  }
  func.func @transform_9(%arg0: i32) -> (i32, i32) {
    %c0_i32 = arith.constant 0 : i32
    %c0_i32_0 = arith.constant 0 : i32
    %c0_i32_1 = arith.constant 0 : i32
    return %c0_i32, %c0_i32_0 : i32, i32
  }
  func.func @transform_10(%arg0: i32) -> (i32, i32) {
    %c0_i32 = arith.constant 0 : i32
    %c0_i32_0 = arith.constant 0 : i32
    %c0_i32_1 = arith.constant 0 : i32
    return %c0_i32, %c0_i32_0 : i32, i32
  }
  func.func @transform_11(%arg0: i32) -> (i32, i32) {
    %c0_i32 = arith.constant 0 : i32
    %c0_i32_0 = arith.constant 0 : i32
    %c0_i32_1 = arith.constant 0 : i32
    return %c0_i32, %c0_i32_0 : i32, i32
  }
  func.func @transform_12(%arg0: i32) -> (i32, i32) {
    %c0_i32 = arith.constant 0 : i32
    %c0_i32_0 = arith.constant 0 : i32
    %c0_i32_1 = arith.constant 0 : i32
    return %c0_i32, %c0_i32_0 : i32, i32
  }
  func.func @transform_13(%arg0: i32) -> (i32, i32) {
    %c0_i32 = arith.constant 0 : i32
    %c0_i32_0 = arith.constant 0 : i32
    return %arg0, %c0_i32 : i32, i32
  }
}

</mosaic_0001>

<bundles_post_ra>
// kernel: _forward_impl.1
= control target key start
LH: loop header
LB: loop body
LE: loop exit
PB: predicated region body
PF: predicated region fallthrough
CT: control target
= control target key end

     0   :  { %18 = vsyncpa [#allocation3], 0  ;;  %s2920_s0 = inlined_call_operand.vmem [shape: f32[16,1024], index: 0, kind: input, shape index: {}]   ;;  %s2921_s1 = inlined_call_operand.hbm [shape: bf16[1024,256], index: 1, kind: input, shape index: {}]   ;;  %s2922_s2 = inlined_call_operand.vmem [shape: f32[1,256], index: 2, kind: input, shape index: {}]   ;;  %s2923_s3 = inlined_call_operand.hbm [shape: bf16[256,256], index: 3, kind: input, shape index: {}]   ;;  %s2924_s4 = inlined_call_operand.vmem [shape: f32[1,256], index: 4, kind: input, shape index: {}]   ;;  %s2925_s5 = inlined_call_operand.vmem [shape: bf16[256,128], index: 5, kind: input, shape index: {}]   ;;  %s2926_s6 = inlined_call_operand.vmem [shape: f32[1,128], index: 6, kind: input, shape index: {}]   ;;  %s2927_s7 = inlined_call_operand.hbm [shape: bf16[128,128], index: 7, kind: input, shape index: {}]   ;;  %s2928_s8 = inlined_call_operand.vmem [shape: f32[1,128], index: 8, kind: input, shape index: {}]   ;;  %s2929_s9 = inlined_call_operand.hbm [shape: bf16[128,128], index: 9, kind: input, shape index: {}]   ;;  %s2930_s10 = inlined_call_operand.vmem [shape: f32[1,128], index: 10, kind: input, shape index: {}]   ;;  %s2931_s11 = inlined_call_operand.hbm [shape: bf16[128,128], index: 11, kind: input, shape index: {}]   ;;  %s2932_s12 = inlined_call_operand.vmem [shape: f32[1,128], index: 12, kind: input, shape index: {}]   ;;  %s2933_s13 = inlined_call_operand.vmem [shape: f32[16,128], index: 13, kind: output, shape index: {}]  }
   0x1   :  { %19 = vsyncpa [#allocation5], 0 }
   0x2   :  { %20 = vsyncpa [#allocation8], 0  ;;  %s2614_s25 = smov [#allocation4]   ;;  %s2498_s29 = scalar_lea.hbm %s2923_s3, 4096 }
   0x3   :  { %s42_s26 = sshll.u32 %s2614_s25, 4  ;;  %p2499_p0 = scmp.ne.s32.totalorder %s2923_s3, %s2498_s29  ;;  %s43_s26 = int_to_ptr.vmem [resolvable:$true] %s42_s26 }
   0x4   :  { %p2502_p1 = scmp.lt.u32.totalorder %s2498_s29, %s2923_s3 }
   0x6   :  { %p2504_p2 = pnand %p2502_p1, %p2499_p0 }
   0x8   :  { %2507 = shalt.err (!%p2504_p2)
}
   0x9   :  { %s2508_s17 = scalar_lea.vmem %s43_s26, 4096  ;;  %p2513_p4 = scmp.lt.s32.totalorder %s43_s26, %s43_s26 }
   0xa   :  { %p2509_p3 = scmp.ne.s32.totalorder %s43_s26, %s2508_s17  ;;  %p2514_p5 = scmp.lt.s32.totalorder %s2508_s17, %s2508_s17 }
   0xc   :  { %p2515_p6 = por %p2514_p5, %p2513_p4 }
   0xe   :  { %p2516_p7 = pnand %p2515_p6, %p2509_p3 }
  0x10   :  { %2519 = shalt.err (!%p2516_p7)
}
  0x11   :  { %s2615_s18 = smov 128   ;;  %s2616_s19 = smov 8  }
  0x12   :  { %48 = dma.hbm_to_vmem [thread:$0]  %s2923_s3, 4096, %s43_s26, [#allocation5], %s2615_s18, %s2615_s18, %s2616_s19  }
  0x13   :  { %s2617_s22 = smov [#allocation7]   ;;  %s2618_s24 = smov [#allocation2]  }
  0x14   :  { %s74_s23 = sshll.u32 %s2617_s22, 4  ;;  %s28_s25 = sshll.u32 %s2618_s24, 4  ;;  %s75_s23 = int_to_ptr.vmem [resolvable:$true] %s74_s23  ;;  %s29_s25 = int_to_ptr.vmem [resolvable:$true] %s28_s25 }
  0x15   :  { %s2520_s29 = scalar_lea.hbm %s2929_s9, 1024 }
  0x16   :  { %p2521_p8 = scmp.ne.s32.totalorder %s2929_s9, %s2520_s29  ;;  %p2524_p9 = scmp.lt.u32.totalorder %s2520_s29, %s2929_s9 }
  0x18   :  { %p2526_p10 = pnand %p2524_p9, %p2521_p8 }
  0x1a   :  { %2529 = shalt.err (!%p2526_p10)
}
  0x1b   :  { %s2530_s3 = scalar_lea.vmem %s75_s23, 1024  ;;  %p2535_p12 = scmp.lt.s32.totalorder %s75_s23, %s75_s23 }
  0x1c   :  { %p2531_p11 = scmp.ne.s32.totalorder %s75_s23, %s2530_s3  ;;  %p2536_p13 = scmp.lt.s32.totalorder %s2530_s3, %s2530_s3 }
  0x1e   :  { %p2537_p0 = por %p2536_p13, %p2535_p12 }
  0x20   :  { %p2538_p1 = pnand %p2537_p0, %p2531_p11 }
  0x22   :  { %2541 = shalt.err (!%p2538_p1)
}
  0x23   :  { %s2619_s26 = smov 64   ;;  %s2620_s17 = smov 4  }
  0x24   :  { %80 = dma.hbm_to_vmem [thread:$0]  %s2929_s9, 1024, %s75_s23, [#allocation8], %s2619_s26, %s2619_s26, %s2620_s17  }
  0x25   :  { %s2542_s27 = scalar_lea.hbm %s2921_s1, 16384 }
  0x26   :  { %p2543_p2 = scmp.ne.s32.totalorder %s2921_s1, %s2542_s27  ;;  %p2546_p3 = scmp.lt.u32.totalorder %s2542_s27, %s2921_s1 }
  0x28   :  { %p2548_p4 = pnand %p2546_p3, %p2543_p2 }
  0x2a   :  { %2551 = shalt.err (!%p2548_p4)
}
  0x2b   :  { %s2552_s15 = scalar_lea.vmem %s29_s25, 16384  ;;  %p2557_p6 = scmp.lt.s32.totalorder %s29_s25, %s29_s25 }
  0x2c   :  { %p2553_p5 = scmp.ne.s32.totalorder %s29_s25, %s2552_s15  ;;  %p2558_p7 = scmp.lt.s32.totalorder %s2552_s15, %s2552_s15 }
  0x2e   :  { %p2559_p8 = por %p2558_p7, %p2557_p6 }
  0x30   :  { %p2560_p9 = pnand %p2559_p8, %p2553_p5 }
  0x32   :  { %2563 = shalt.err (!%p2560_p9)
}
  0x33   :  { %34 = dma.hbm_to_vmem [thread:$0]  %s2921_s1, 16384, %s29_s25, [#allocation3], %s2615_s18, %s2615_s18, %s2616_s19  }
  0x34   :  { %s2621_s16 = smov [#allocation6]   ;;  %s2622_s20 = smov [#allocation9]  }
  0x35   :  { %s60_s3 = sshll.u32 %s2621_s16, 4  ;;  %s88_s21 = sshll.u32 %s2622_s20, 4  ;;  %s61_s3 = int_to_ptr.vmem [resolvable:$true] %s60_s3  ;;  %s89_s21 = int_to_ptr.vmem [resolvable:$true] %s88_s21 }
  0x36   :  { %s2564_s27 = scalar_lea.hbm %s2927_s7, 1024 }
  0x37   :  { %p2565_p10 = scmp.ne.s32.totalorder %s2927_s7, %s2564_s27  ;;  %p2568_p11 = scmp.lt.u32.totalorder %s2564_s27, %s2927_s7 }
  0x39   :  { %p2570_p12 = pnand %p2568_p11, %p2565_p10 }
  0x3b   :  { %2573 = shalt.err (!%p2570_p12)
}
  0x3c   :  { %s2574_s1 = scalar_lea.vmem %s61_s3, 1024  ;;  %p2579_p0 = scmp.lt.s32.totalorder %s61_s3, %s61_s3 }
  0x3d   :  { %p2575_p13 = scmp.ne.s32.totalorder %s61_s3, %s2574_s1  ;;  %p2580_p1 = scmp.lt.s32.totalorder %s2574_s1, %s2574_s1 }
  0x3f   :  { %p2581_p2 = por %p2580_p1, %p2579_p0 }
  0x41   :  { %p2582_p3 = pnand %p2581_p2, %p2575_p13 }
  0x43   :  { %2585 = shalt.err (!%p2582_p3)
}
  0x44   :  { %66 = dma.hbm_to_vmem [thread:$0]  %s2927_s7, 1024, %s61_s3, [#allocation5], %s2619_s26, %s2619_s26, %s2620_s17  }
  0x45   :  { %s2586_s9 = scalar_lea.hbm %s2931_s11, 1024 }
  0x46   :  { %p2587_p4 = scmp.ne.s32.totalorder %s2931_s11, %s2586_s9  ;;  %p2590_p5 = scmp.lt.u32.totalorder %s2586_s9, %s2931_s11 }
  0x48   :  { %p2592_p6 = pnand %p2590_p5, %p2587_p4 }
  0x4a   :  { %2595 = shalt.err (!%p2592_p6)
}
  0x4b   :  { %s2596_s24 = scalar_lea.vmem %s89_s21, 1024  ;;  %p2601_p8 = scmp.lt.s32.totalorder %s89_s21, %s89_s21 }
  0x4c   :  { %p2597_p7 = scmp.ne.s32.totalorder %s89_s21, %s2596_s24  ;;  %p2602_p9 = scmp.lt.s32.totalorder %s2596_s24, %s2596_s24 }
  0x4e   :  { %p2603_p10 = por %p2602_p9, %p2601_p8 }
  0x50   :  { %p2604_p11 = pnand %p2603_p10, %p2597_p7 }
  0x52   :  { %2607 = shalt.err (!%p2604_p11)
}
  0x53   :  { %94 = dma.hbm_to_vmem [thread:$0]  %s2931_s11, 1024, %s89_s21, [#allocation8], %s2619_s26, %s2619_s26, %s2620_s17  }
  0x54   :  { %2608 = dma.done.wait [#allocation3], 16384  }
  0x55   :  { %2609 = vsyncadd [#allocation3], 4294950912 }
  0x56   :  { %2610 = dma.done.wait [#allocation5], 5120  }
  0x57   :  { %2611 = vsyncadd [#allocation5], 4294962176 }
  0x58   :  { %2612 = dma.done.wait [#allocation8], 2048  }
  0x59   :  { %2613 = vsyncadd [#allocation8], 4294965248  ;;  %v2218_v0 = vld [vmem:[#allocation2 + $0x4] ss:$8 sps:$4 sm:$0xff]   ;;  %v2220_v1 = vld [vmem:[#allocation2] ss:$8 sps:$4 sm:$0xff]  }
  0x5a   :  { %917 = vmatprep.subr.bf16.mxu0 %v2218_v0  ;;  %v2221_v2 = vld [vmem:[#allocation2 + $0x14] ss:$8 sps:$4 sm:$0xff]   ;;  %v2223_v3 = vld [vmem:[#allocation2 + $0x10] ss:$8 sps:$4 sm:$0xff]   ;;  %v2224_v4 = vld [vmem:[#allocation2 + $0x24] ss:$8 sps:$4 sm:$0xff]  }
  0x5b   :  { %918 = vmatpush1.bf16.msra.mxu0 %v2220_v1  ;;  %v2226_v5 = vld [vmem:[#allocation2 + $0x20] ss:$8 sps:$4 sm:$0xff]   ;;  %v2227_v6 = vld [vmem:[#allocation2 + $0x34] ss:$8 sps:$4 sm:$0xff]   ;;  %v2229_v7 = vld [vmem:[#allocation2 + $0x30] ss:$8 sps:$4 sm:$0xff]  }
  0x5c   :  { %919 = vmatprep.subr.bf16.mxu0 %v2221_v2  ;;  %v2230_v8 = vld [vmem:[#allocation2 + $0x44] ss:$8 sps:$4 sm:$0xff]   ;;  %v2232_v9 = vld [vmem:[#allocation2 + $0x40] ss:$8 sps:$4 sm:$0xff]   ;;  %v2233_v10 = vld [vmem:[#allocation2 + $0x54] ss:$8 sps:$4 sm:$0xff]  }
  0x5d   :  { %v2235_v11 = vld [vmem:[#allocation2 + $0x50] ss:$8 sps:$4 sm:$0xff]   ;;  %v2236_v12 = vld [vmem:[#allocation2 + $0x64] ss:$8 sps:$4 sm:$0xff]   ;;  %v2238_v16 = vld [vmem:[#allocation2 + $0x60] ss:$8 sps:$4 sm:$0xff]  }
  0x5e   :  { %v114_v13 = vld [vmem:[%s2920_s0 + $0x8] sm:$0xff]  ;;  %v2239_v17 = vld [vmem:[#allocation2 + $0x74] ss:$8 sps:$4 sm:$0xff]   ;;  %v2241_v18 = vld [vmem:[#allocation2 + $0x70] ss:$8 sps:$4 sm:$0xff]   ;;  %vm2624_vm0 = vmmov 0  }
  0x5f   :  { %920 = vmatpush1.bf16.msra.mxu0 %v2223_v3  ;;  %v122_v14 = vld [vmem:[%s2920_s0 + $0x48] sm:$0xff]  ;;  %v2245_v21 = vld [vmem:[#allocation2 + $0x94] ss:$8 sps:$4 sm:$0xff]   ;;  %v2247_v22 = vld [vmem:[#allocation2 + $0x90] ss:$8 sps:$4 sm:$0xff]  }
  0x60   :  { %921 = vmatprep.subr.bf16.mxu0 %v2224_v4  ;;  %v130_v15 = vpack.c.bf16 %v122_v14, %v114_v13  ;;  %v2242_v19 = vld [vmem:[#allocation2 + $0x84] ss:$8 sps:$4 sm:$0xff]   ;;  %v2244_v20 = vld [vmem:[#allocation2 + $0x80] ss:$8 sps:$4 sm:$0xff]   ;;  %v2251_v25 = vld [vmem:[#allocation2 + $0xb4] ss:$8 sps:$4 sm:$0xff]  }
  0x61   :  { %v2248_v23 = vld [vmem:[#allocation2 + $0xa4] ss:$8 sps:$4 sm:$0xff]   ;;  %v2250_v24 = vld [vmem:[#allocation2 + $0xa0] ss:$8 sps:$4 sm:$0xff]   ;;  %v2253_v26 = vld [vmem:[#allocation2 + $0xb0] ss:$8 sps:$4 sm:$0xff]  }
  0x62   :  { %949 = vmatprep.mubr.bf16.mxu0 %v130_v15  ;;  %v2254_v27 = vld [vmem:[#allocation2 + $0xc4] ss:$8 sps:$4 sm:$0xff]   ;;  %v2256_v28 = vld [vmem:[#allocation2 + $0xc0] ss:$8 sps:$4 sm:$0xff]   ;;  %v2257_v29 = vld [vmem:[#allocation2 + $0xd4] ss:$8 sps:$4 sm:$0xff]  }
  0x63   :  { %922 = vmatpush1.bf16.msra.mxu0 %v2226_v5  ;;  %v2259_v30 = vld [vmem:[#allocation2 + $0xd0] ss:$8 sps:$4 sm:$0xff]   ;;  %v2260_v31 = vld [vmem:[#allocation2 + $0xe4] ss:$8 sps:$4 sm:$0xff]   ;;  %v2262_v32 = vld [vmem:[#allocation2 + $0xe0] ss:$8 sps:$4 sm:$0xff]  }
  0x64   :  { %923 = vmatprep.subr.bf16.mxu0 %v2227_v6  ;;  %v2263_v33 = vld [vmem:[#allocation2 + $0xf4] ss:$8 sps:$4 sm:$0xff]   ;;  %v2265_v34 = vld [vmem:[#allocation2 + $0xf0] ss:$8 sps:$4 sm:$0xff]   ;;  %v2268_v35 = vld [vmem:[#allocation2 + $0x104] ss:$8 sps:$4 sm:$0xff]  }
  0x65   :  { %v113_v36 = vld [vmem:[%s2920_s0] sm:$0xff]  ;;  %v116_v38 = vld [vmem:[%s2920_s0 + $0x18] sm:$0xff]  ;;  %v126_v13 = vld [vmem:[%s2920_s0 + $0x68] sm:$0xff] }
  0x66   :  { %v121_v37 = vld [vmem:[%s2920_s0 + $0x40] sm:$0xff]  ;;  %v124_v39 = vld [vmem:[%s2920_s0 + $0x58] sm:$0xff] }
  0x67   :  { %924 = vmatpush1.bf16.msra.mxu0 %v2229_v7  ;;  %v129_v40 = vpack.c.bf16 %v121_v37, %v113_v36  ;;  %v2266_v41 = vld [vmem:[#allocation2 + $0x100] ss:$8 sps:$4 sm:$0xff]   ;;  %v132_v42 = vpack.c.bf16 %v124_v39, %v116_v38  ;;  %v2271_v43 = vld [vmem:[#allocation2 + $0x114] ss:$8 sps:$4 sm:$0xff]   ;;  %v2269_v44 = vld [vmem:[#allocation2 + $0x110] ss:$8 sps:$4 sm:$0xff]  }
  0x68   :  { %925 = vmatprep.subr.bf16.mxu0 %v2230_v8  ;;  %v2274_v45 = vld [vmem:[#allocation2 + $0x124] ss:$8 sps:$4 sm:$0xff]   ;;  %v2272_v46 = vld [vmem:[#allocation2 + $0x120] ss:$8 sps:$4 sm:$0xff]   ;;  %v2277_v47 = vld [vmem:[#allocation2 + $0x134] ss:$8 sps:$4 sm:$0xff]  }
  0x69   :  { %v2275_v48 = vld [vmem:[#allocation2 + $0x130] ss:$8 sps:$4 sm:$0xff]   ;;  %v2280_v49 = vld [vmem:[#allocation2 + $0x144] ss:$8 sps:$4 sm:$0xff]   ;;  %v2278_v50 = vld [vmem:[#allocation2 + $0x140] ss:$8 sps:$4 sm:$0xff]  }
  0x6a   :  { %v2283_v51 = vld [vmem:[#allocation2 + $0x154] ss:$8 sps:$4 sm:$0xff]   ;;  %v2281_v52 = vld [vmem:[#allocation2 + $0x150] ss:$8 sps:$4 sm:$0xff]   ;;  %v2286_v53 = vld [vmem:[#allocation2 + $0x164] ss:$8 sps:$4 sm:$0xff]  }
  0x6b   :  { %926 = vmatpush1.bf16.msra.mxu0 %v2232_v9  ;;  %v2284_v54 = vld [vmem:[#allocation2 + $0x160] ss:$8 sps:$4 sm:$0xff]   ;;  %v2289_v55 = vld [vmem:[#allocation2 + $0x174] ss:$8 sps:$4 sm:$0xff]   ;;  %v2287_v56 = vld [vmem:[#allocation2 + $0x170] ss:$8 sps:$4 sm:$0xff]  }
  0x6c   :  { %927 = vmatprep.subr.bf16.mxu0 %v2233_v10  ;;  %v2292_v57 = vld [vmem:[#allocation2 + $0x184] ss:$8 sps:$4 sm:$0xff]   ;;  %v2290_v58 = vld [vmem:[#allocation2 + $0x180] ss:$8 sps:$4 sm:$0xff]   ;;  %v2295_v59 = vld [vmem:[#allocation2 + $0x194] ss:$8 sps:$4 sm:$0xff]  }
  0x6d   :  { %v2293_v60 = vld [vmem:[#allocation2 + $0x190] ss:$8 sps:$4 sm:$0xff]   ;;  %v2298_v61 = vld [vmem:[#allocation2 + $0x1a4] ss:$8 sps:$4 sm:$0xff]   ;;  %v2296_v62 = vld [vmem:[#allocation2 + $0x1a0] ss:$8 sps:$4 sm:$0xff]  }
  0x6e   :  { %v2301_v63 = vld [vmem:[#allocation2 + $0x1b4] ss:$8 sps:$4 sm:$0xff]   ;;  %v2299_v0 = vld [vmem:[#allocation2 + $0x1b0] ss:$8 sps:$4 sm:$0xff]   ;;  %v2304_v1 = vld [vmem:[#allocation2 + $0x1c4] ss:$8 sps:$4 sm:$0xff]  }
  0x6f   :  { %928 = vmatpush1.bf16.msra.mxu0 %v2235_v11  ;;  %v2302_v2 = vld [vmem:[#allocation2 + $0x1c0] ss:$8 sps:$4 sm:$0xff]   ;;  %v2307_v3 = vld [vmem:[#allocation2 + $0x1d4] ss:$8 sps:$4 sm:$0xff]   ;;  %v2305_v4 = vld [vmem:[#allocation2 + $0x1d0] ss:$8 sps:$4 sm:$0xff]  }
  0x70   :  { %929 = vmatprep.subr.bf16.mxu0 %v2236_v12  ;;  %v2310_v5 = vld [vmem:[#allocation2 + $0x1e4] ss:$8 sps:$4 sm:$0xff]   ;;  %v2308_v6 = vld [vmem:[#allocation2 + $0x1e0] ss:$8 sps:$4 sm:$0xff]   ;;  %v2313_v7 = vld [vmem:[#allocation2 + $0x1f4] ss:$8 sps:$4 sm:$0xff]  }
  0x71   :  { %v2311_v8 = vld [vmem:[#allocation2 + $0x1f0] ss:$8 sps:$4 sm:$0xff]   ;;  %v2316_v11 = vld [vmem:[#allocation2 + $0x204] ss:$8 sps:$4 sm:$0xff]   ;;  %v2314_v15 = vld [vmem:[#allocation2 + $0x200] ss:$8 sps:$4 sm:$0xff]  }
  0x72   :  { %v115_v9 = vld [vmem:[%s2920_s0 + $0x10] sm:$0xff]  ;;  %v118_v12 = vld [vmem:[%s2920_s0 + $0x28] sm:$0xff] }
  0x73   :  { %930 = vmatpush1.bf16.msra.mxu0 %v2238_v16  ;;  %v123_v10 = vld [vmem:[%s2920_s0 + $0x50] sm:$0xff]  ;;  %v134_v16 = vpack.c.bf16 %v126_v13, %v118_v12  ;;  %v2334_v38 = vld [vmem:[#allocation2 + $0x264] ss:$8 sps:$4 sm:$0xff]   ;;  %v120_v13 = vld [vmem:[%s2920_s0 + $0x38] sm:$0xff] }
  0x74   :  { %931 = vmatprep.subr.bf16.mxu0 %v2239_v17  ;;  %v131_v14 = vpack.c.bf16 %v123_v10, %v115_v9  ;;  %v2319_v17 = vld [vmem:[#allocation2 + $0x214] ss:$8 sps:$4 sm:$0xff]   ;;  %v2329_v37 = vld [vmem:[#allocation2 + $0x250] ss:$8 sps:$4 sm:$0xff]   ;;  %v117_v10 = vld [vmem:[%s2920_s0 + $0x20] sm:$0xff] }
  0x75   :  { %v2425_v36 = vld [vmem:[#allocation4 + $0x54] ss:$8 sps:$4 sm:$0xff]   ;;  %v2427_v39 = vld [vmem:[#allocation4 + $0x50] ss:$8 sps:$4 sm:$0xff]   ;;  %v2364_v12 = vld [vmem:[#allocation2 + $0x304] ss:$8 sps:$4 sm:$0xff]  }
  0x76   :  { %v2359_v9 = vld [vmem:[#allocation2 + $0x2f0] ss:$8 sps:$4 sm:$0xff]  }
  0x77   :  { %932 = vmatpush1.bf16.msra.mxu0 %v2241_v18  ;;  %v2410_v18 = vld [vmem:[#allocation4 + $0x4] ss:$8 sps:$4 sm:$0xff]  }
  0x78   :  { %933 = vmatprep.subr.bf16.mxu0 %v2242_v19  ;;  %v2412_v19 = vld [vmem:[#allocation4] ss:$8 sps:$4 sm:$0xff]   ;;  %1299 = vmatprep.subr.bf16.mxu1 %v2410_v18  ;;  %v2367_v18 = vld [vmem:[#allocation2 + $0x314] ss:$8 sps:$4 sm:$0xff]  }
  0x79   :  { %1300 = vmatpush1.bf16.msra.mxu1 %v2412_v19  ;;  %v2365_v19 = vld [vmem:[#allocation2 + $0x310] ss:$8 sps:$4 sm:$0xff]  }
  0x7b   :  { %934 = vmatpush1.bf16.msra.mxu0 %v2244_v20  ;;  %v2413_v20 = vld [vmem:[#allocation4 + $0x14] ss:$8 sps:$4 sm:$0xff]  }
  0x7c   :  { %935 = vmatprep.subr.bf16.mxu0 %v2245_v21  ;;  %v2317_v21 = vld [vmem:[#allocation2 + $0x210] ss:$8 sps:$4 sm:$0xff]   ;;  %1301 = vmatprep.subr.bf16.mxu1 %v2413_v20  ;;  %v2370_v20 = vld [vmem:[#allocation2 + $0x324] ss:$8 sps:$4 sm:$0xff]  }
  0x7f   :  { %936 = vmatpush1.bf16.msra.mxu0 %v2247_v22  ;;  %v2322_v22 = vld [vmem:[#allocation2 + $0x224] ss:$8 sps:$4 sm:$0xff]  }
  0x80   :  { %937 = vmatprep.subr.bf16.mxu0 %v2248_v23  ;;  %v2415_v23 = vld [vmem:[#allocation4 + $0x10] ss:$8 sps:$4 sm:$0xff]  }
  0x81   :  { %1302 = vmatpush1.bf16.msra.mxu1 %v2415_v23  ;;  %v2371_v23 = vld [vmem:[#allocation2 + $0x330] ss:$8 sps:$4 sm:$0xff]  }
  0x83   :  { %938 = vmatpush1.bf16.msra.mxu0 %v2250_v24  ;;  %v2416_v24 = vld [vmem:[#allocation4 + $0x24] ss:$8 sps:$4 sm:$0xff]  }
  0x84   :  { %939 = vmatprep.subr.bf16.mxu0 %v2251_v25  ;;  %v2320_v25 = vld [vmem:[#allocation2 + $0x220] ss:$8 sps:$4 sm:$0xff]   ;;  %1303 = vmatprep.subr.bf16.mxu1 %v2416_v24  ;;  %v2376_v24 = vld [vmem:[#allocation2 + $0x344] ss:$8 sps:$4 sm:$0xff]  }
  0x87   :  { %940 = vmatpush1.bf16.msra.mxu0 %v2253_v26  ;;  %v2325_v26 = vld [vmem:[#allocation2 + $0x234] ss:$8 sps:$4 sm:$0xff]  }
  0x88   :  { %941 = vmatprep.subr.bf16.mxu0 %v2254_v27  ;;  %v2418_v27 = vld [vmem:[#allocation4 + $0x20] ss:$8 sps:$4 sm:$0xff]  }
  0x89   :  { %1304 = vmatpush1.bf16.msra.mxu1 %v2418_v27  ;;  %v2377_v27 = vld [vmem:[#allocation2 + $0x350] ss:$8 sps:$4 sm:$0xff]  }
  0x8b   :  { %942 = vmatpush1.bf16.msra.mxu0 %v2256_v28  ;;  %v2419_v28 = vld [vmem:[#allocation4 + $0x34] ss:$8 sps:$4 sm:$0xff]  }
  0x8c   :  { %943 = vmatprep.subr.bf16.mxu0 %v2257_v29  ;;  %v2323_v29 = vld [vmem:[#allocation2 + $0x230] ss:$8 sps:$4 sm:$0xff]   ;;  %1305 = vmatprep.subr.bf16.mxu1 %v2419_v28  ;;  %v2382_v28 = vld [vmem:[#allocation2 + $0x364] ss:$8 sps:$4 sm:$0xff]  }
  0x8f   :  { %944 = vmatpush1.bf16.msra.mxu0 %v2259_v30  ;;  %v2328_v30 = vld [vmem:[#allocation2 + $0x244] ss:$8 sps:$4 sm:$0xff]  }
  0x90   :  { %945 = vmatprep.subr.bf16.mxu0 %v2260_v31  ;;  %v2421_v31 = vld [vmem:[#allocation4 + $0x30] ss:$8 sps:$4 sm:$0xff]  }
  0x91   :  { %1306 = vmatpush1.bf16.msra.mxu1 %v2421_v31  ;;  %v2383_v31 = vld [vmem:[#allocation2 + $0x370] ss:$8 sps:$4 sm:$0xff]  }
  0x93   :  { %946 = vmatpush1.bf16.msra.mxu0 %v2262_v32  ;;  %v2422_v32 = vld [vmem:[#allocation4 + $0x44] ss:$8 sps:$4 sm:$0xff]  }
  0x94   :  { %947 = vmatprep.subr.bf16.mxu0 %v2263_v33  ;;  %v2326_v33 = vld [vmem:[#allocation2 + $0x240] ss:$8 sps:$4 sm:$0xff]   ;;  %1307 = vmatprep.subr.bf16.mxu1 %v2422_v32  ;;  %v2388_v32 = vld [vmem:[#allocation2 + $0x384] ss:$8 sps:$4 sm:$0xff]  }
  0x97   :  { %948 = vmatpush1.bf16.msra.mxu0 %v2265_v34  ;;  %v2331_v34 = vld [vmem:[#allocation2 + $0x254] ss:$8 sps:$4 sm:$0xff]  }
  0x98   :  { %960 = vmatprep.subr.bf16.mxu0 %v2268_v35  ;;  %v2424_v35 = vld [vmem:[#allocation4 + $0x40] ss:$8 sps:$4 sm:$0xff]  }
  0x99   :  { %1308 = vmatpush1.bf16.msra.mxu1 %v2424_v35  ;;  %v2389_v35 = vld [vmem:[#allocation2 + $0x390] ss:$8 sps:$4 sm:$0xff]  }
  0x9a   :  { %950 = vmatmul.mubr.bf16.vlgmr.msra.gmra.mrb[0].mxu0 %v129_v40  ;;  %1309 = vmatprep.subr.bf16.mxu1 %v2425_v36  ;;  %v2428_v40 = vld [vmem:[#allocation4 + $0x64] ss:$8 sps:$4 sm:$0xff]  }
  0x9b   :  { %961 = vmatpush1.bf16.msra.mxu0 %v2266_v41  ;;  %992 = vmatprep.mubr.bf16.mxu0 %v132_v42  ;;  %v2332_v41 = vld [vmem:[#allocation2 + $0x260] ss:$8 sps:$4 sm:$0xff]   ;;  %v2337_v42 = vld [vmem:[#allocation2 + $0x274] ss:$8 sps:$4 sm:$0xff]   ;;  %v2394_v36 = vld [vmem:[#allocation2 + $0x3a4] ss:$8 sps:$4 sm:$0xff]  }
  0x9c   :  { %962 = vmatprep.subr.bf16.mxu0 %v2271_v43  ;;  %v2430_v43 = vld [vmem:[#allocation4 + $0x60] ss:$8 sps:$4 sm:$0xff]  }
  0x9d   :  { %1310 = vmatpush1.bf16.msra.mxu1 %v2427_v39  ;;  %v2395_v39 = vld [vmem:[#allocation2 + $0x3b0] ss:$8 sps:$4 sm:$0xff]  }
  0x9e   :  { %1311 = vmatprep.subr.bf16.mxu1 %v2428_v40  ;;  %v2400_v40 = vld [vmem:[#allocation2 + $0x3c4] ss:$8 sps:$4 sm:$0xff]  }
  0x9f   :  { %963 = vmatpush1.bf16.msra.mxu0 %v2269_v44  ;;  %v2431_v44 = vld [vmem:[#allocation4 + $0x74] ss:$8 sps:$4 sm:$0xff]  }
  0xa0   :  { %964 = vmatprep.subr.bf16.mxu0 %v2274_v45  ;;  %v2335_v45 = vld [vmem:[#allocation2 + $0x270] ss:$8 sps:$4 sm:$0xff]  }
  0xa1   :  { %1312 = vmatpush1.bf16.msra.mxu1 %v2430_v43  ;;  %v2401_v43 = vld [vmem:[#allocation2 + $0x3d0] ss:$8 sps:$4 sm:$0xff]  }
  0xa2   :  { %1313 = vmatprep.subr.bf16.mxu1 %v2431_v44  ;;  %v2406_v44 = vld [vmem:[#allocation2 + $0x3e4] ss:$8 sps:$4 sm:$0xff]  }
  0xa3   :  { %965 = vmatpush1.bf16.msra.mxu0 %v2272_v46  ;;  %v2340_v46 = vld [vmem:[#allocation2 + $0x284] ss:$8 sps:$4 sm:$0xff]  }
  0xa4   :  { %966 = vmatprep.subr.bf16.mxu0 %v2277_v47  ;;  %v2433_v47 = vld [vmem:[#allocation4 + $0x70] ss:$8 sps:$4 sm:$0xff]  }
  0xa5   :  { %1314 = vmatpush1.bf16.msra.mxu1 %v2433_v47  ;;  %v2407_v47 = vld [vmem:[#allocation2 + $0x3f0] ss:$8 sps:$4 sm:$0xff]  }
  0xa7   :  { %967 = vmatpush1.bf16.msra.mxu0 %v2275_v48  ;;  %v2434_v48 = vld [vmem:[#allocation4 + $0x84] ss:$8 sps:$4 sm:$0xff]  }
  0xa8   :  { %968 = vmatprep.subr.bf16.mxu0 %v2280_v49  ;;  %v2338_v49 = vld [vmem:[#allocation2 + $0x280] ss:$8 sps:$4 sm:$0xff]   ;;  %1315 = vmatprep.subr.bf16.mxu1 %v2434_v48  ;;  %v119_v48 = vld [vmem:[%s2920_s0 + $0x30] sm:$0xff] }
  0xab   :  { %969 = vmatpush1.bf16.msra.mxu0 %v2278_v50  ;;  %v2343_v50 = vld [vmem:[#allocation2 + $0x294] ss:$8 sps:$4 sm:$0xff]  }
  0xac   :  { %970 = vmatprep.subr.bf16.mxu0 %v2283_v51  ;;  %v2436_v51 = vld [vmem:[#allocation4 + $0x80] ss:$8 sps:$4 sm:$0xff]  }
  0xad   :  { %1316 = vmatpush1.bf16.msra.mxu1 %v2436_v51  ;;  %v2451_v51 = vld [vmem:[#allocation4 + $0xd0] ss:$8 sps:$4 sm:$0xff]  }
  0xaf   :  { %971 = vmatpush1.bf16.msra.mxu0 %v2281_v52  ;;  %v2437_v52 = vld [vmem:[#allocation4 + $0x94] ss:$8 sps:$4 sm:$0xff]  }
  0xb0   :  { %972 = vmatprep.subr.bf16.mxu0 %v2286_v53  ;;  %v2341_v53 = vld [vmem:[#allocation2 + $0x290] ss:$8 sps:$4 sm:$0xff]   ;;  %1317 = vmatprep.subr.bf16.mxu1 %v2437_v52  ;;  %v2452_v52 = vld [vmem:[#allocation4 + $0xe4] ss:$8 sps:$4 sm:$0xff]  }
  0xb3   :  { %973 = vmatpush1.bf16.msra.mxu0 %v2284_v54  ;;  %v2346_v54 = vld [vmem:[#allocation2 + $0x2a4] ss:$8 sps:$4 sm:$0xff]  }
  0xb4   :  { %974 = vmatprep.subr.bf16.mxu0 %v2289_v55  ;;  %v2439_v55 = vld [vmem:[#allocation4 + $0x90] ss:$8 sps:$4 sm:$0xff]  }
  0xb5   :  { %1318 = vmatpush1.bf16.msra.mxu1 %v2439_v55  ;;  %v2457_v55 = vld [vmem:[#allocation4 + $0xf0] ss:$8 sps:$4 sm:$0xff]  }
  0xb7   :  { %975 = vmatpush1.bf16.msra.mxu0 %v2287_v56  ;;  %v2440_v56 = vld [vmem:[#allocation4 + $0xa4] ss:$8 sps:$4 sm:$0xff]  }
  0xb8   :  { %976 = vmatprep.subr.bf16.mxu0 %v2292_v57  ;;  %v2344_v57 = vld [vmem:[#allocation2 + $0x2a0] ss:$8 sps:$4 sm:$0xff]   ;;  %1319 = vmatprep.subr.bf16.mxu1 %v2440_v56 }
  0xb9   :  { %v2458_v56 = vld [vmem:[%s2925_s5 + $0x40] sm:$0xff]  }
  0xbb   :  { %977 = vmatpush1.bf16.msra.mxu0 %v2290_v58  ;;  %v2349_v58 = vld [vmem:[#allocation2 + $0x2b4] ss:$8 sps:$4 sm:$0xff]  }
  0xbc   :  { %978 = vmatprep.subr.bf16.mxu0 %v2295_v59  ;;  %v2442_v59 = vld [vmem:[#allocation4 + $0xa0] ss:$8 sps:$4 sm:$0xff]  }
  0xbd   :  { %1320 = vmatpush1.bf16.msra.mxu1 %v2442_v59 }
  0xbf   :  { %979 = vmatpush1.bf16.msra.mxu0 %v2293_v60  ;;  %v2443_v60 = vld [vmem:[#allocation4 + $0xb4] ss:$8 sps:$4 sm:$0xff]  }
  0xc0   :  { %980 = vmatprep.subr.bf16.mxu0 %v2298_v61  ;;  %v2347_v61 = vld [vmem:[#allocation2 + $0x2b0] ss:$8 sps:$4 sm:$0xff]   ;;  %1321 = vmatprep.subr.bf16.mxu1 %v2443_v60  ;;  %v265_v60 = vld [vmem:[%s2922_s2] sm:$0x3] }
  0xc3   :  { %981 = vmatpush1.bf16.msra.mxu0 %v2296_v62  ;;  %v2352_v62 = vld [vmem:[#allocation2 + $0x2c4] ss:$8 sps:$4 sm:$0xff]  }
  0xc4   :  { %982 = vmatprep.subr.bf16.mxu0 %v2301_v63  ;;  %v2445_v63 = vld [vmem:[#allocation4 + $0xb0] ss:$8 sps:$4 sm:$0xff]  }
  0xc5   :  { %1322 = vmatpush1.bf16.msra.mxu1 %v2445_v63 }
  0xc7   :  { %983 = vmatpush1.bf16.msra.mxu0 %v2299_v0  ;;  %v2446_v0 = vld [vmem:[#allocation4 + $0xc4] ss:$8 sps:$4 sm:$0xff]  }
  0xc8   :  { %984 = vmatprep.subr.bf16.mxu0 %v2304_v1  ;;  %v2350_v1 = vld [vmem:[#allocation2 + $0x2c0] ss:$8 sps:$4 sm:$0xff]   ;;  %1323 = vmatprep.subr.bf16.mxu1 %v2446_v0 }
  0xcb   :  { %985 = vmatpush1.bf16.msra.mxu0 %v2302_v2  ;;  %v2355_v2 = vld [vmem:[#allocation2 + $0x2d4] ss:$8 sps:$4 sm:$0xff]  }
  0xcc   :  { %986 = vmatprep.subr.bf16.mxu0 %v2307_v3  ;;  %v2448_v3 = vld [vmem:[#allocation4 + $0xc0] ss:$8 sps:$4 sm:$0xff]  }
  0xcd   :  { %1324 = vmatpush1.bf16.msra.mxu1 %v2448_v3 }
  0xcf   :  { %987 = vmatpush1.bf16.msra.mxu0 %v2305_v4  ;;  %v2449_v4 = vld [vmem:[#allocation4 + $0xd4] ss:$8 sps:$4 sm:$0xff]  }
  0xd0   :  { %988 = vmatprep.subr.bf16.mxu0 %v2310_v5  ;;  %v2353_v5 = vld [vmem:[#allocation2 + $0x2d0] ss:$8 sps:$4 sm:$0xff]   ;;  %1325 = vmatprep.subr.bf16.mxu1 %v2449_v4 }
  0xd1   :  { %1326 = vmatpush1.bf16.msra.mxu1 %v2451_v51  ;;  %v2478_v51 = vld [vmem:[#allocation6 + $0x20] sm:$0xff]  }
  0xd2   :  { %1327 = vmatprep.subr.bf16.mxu1 %v2452_v52  ;;  %v2479_v52 = vld [vmem:[#allocation6 + $0x28] sm:$0xff]  }
  0xd3   :  { %989 = vmatpush1.bf16.msra.mxu0 %v2308_v6  ;;  %v2358_v6 = vld [vmem:[#allocation2 + $0x2e4] ss:$8 sps:$4 sm:$0xff]  }
  0xd4   :  { %990 = vmatprep.subr.bf16.mxu0 %v2313_v7  ;;  %v2356_v7 = vld [vmem:[#allocation2 + $0x2e0] ss:$8 sps:$4 sm:$0xff]  }
  0xd7   :  { %991 = vmatpush1.bf16.msra.mxu0 %v2311_v8  ;;  %v2361_v8 = vld [vmem:[#allocation2 + $0x2f4] ss:$8 sps:$4 sm:$0xff]  }
  0xd8   :  { %1003 = vmatprep.subr.bf16.mxu0 %v2316_v11  ;;  %v125_v11 = vld [vmem:[%s2920_s0 + $0x60] sm:$0xff] }
  0xda   :  { %993 = vmatmul.mubr.bf16.vlgmr.msra.gmra.mrb[0].mxu0 %v131_v14  ;;  %v128_v14 = vld [vmem:[%s2920_s0 + $0x78] sm:$0xff] }
  0xdb   :  { %1004 = vmatpush1.bf16.msra.mxu0 %v2314_v15  ;;  %1035 = vmatprep.mubr.bf16.mxu0 %v134_v16  ;;  %v133_v15 = vpack.c.bf16 %v125_v11, %v117_v10  ;;  %v2362_v16 = vld [vmem:[#allocation2 + $0x300] ss:$8 sps:$4 sm:$0xff]  }
  0xdc   :  { %1005 = vmatprep.subr.bf16.mxu0 %v2319_v17  ;;  %v136_v17 = vpack.c.bf16 %v128_v14, %v120_v13  ;;  %v2459_v14 = vld [vmem:[%s2925_s5] sm:$0xff]  }
  0xdf   :  { %1006 = vmatpush1.bf16.msra.mxu0 %v2317_v21  ;;  %v2368_v21 = vld [vmem:[#allocation2 + $0x320] ss:$8 sps:$4 sm:$0xff]  }
  0xe0   :  { %1007 = vmatprep.subr.bf16.mxu0 %v2322_v22  ;;  %v2373_v22 = vld [vmem:[#allocation2 + $0x334] ss:$8 sps:$4 sm:$0xff]  }
  0xe3   :  { %1008 = vmatpush1.bf16.msra.mxu0 %v2320_v25  ;;  %v2374_v25 = vld [vmem:[#allocation2 + $0x340] ss:$8 sps:$4 sm:$0xff]  }
  0xe4   :  { %1009 = vmatprep.subr.bf16.mxu0 %v2325_v26  ;;  %v2379_v26 = vld [vmem:[#allocation2 + $0x354] ss:$8 sps:$4 sm:$0xff]  }
  0xe7   :  { %1010 = vmatpush1.bf16.msra.mxu0 %v2323_v29  ;;  %v2380_v29 = vld [vmem:[#allocation2 + $0x360] ss:$8 sps:$4 sm:$0xff]  }
  0xe8   :  { %1011 = vmatprep.subr.bf16.mxu0 %v2328_v30  ;;  %v2385_v30 = vld [vmem:[#allocation2 + $0x374] ss:$8 sps:$4 sm:$0xff]  }
  0xeb   :  { %1012 = vmatpush1.bf16.msra.mxu0 %v2326_v33  ;;  %v2386_v33 = vld [vmem:[#allocation2 + $0x380] ss:$8 sps:$4 sm:$0xff]  }
  0xec   :  { %1013 = vmatprep.subr.bf16.mxu0 %v2331_v34  ;;  %v2391_v34 = vld [vmem:[#allocation2 + $0x394] ss:$8 sps:$4 sm:$0xff]  }
  0xef   :  { %1014 = vmatpush1.bf16.msra.mxu0 %v2329_v37  ;;  %v2392_v37 = vld [vmem:[#allocation2 + $0x3a0] ss:$8 sps:$4 sm:$0xff]  }
  0xf0   :  { %1015 = vmatprep.subr.bf16.mxu0 %v2334_v38  ;;  %v2397_v38 = vld [vmem:[#allocation2 + $0x3b4] ss:$8 sps:$4 sm:$0xff]  }
  0xf3   :  { %1016 = vmatpush1.bf16.msra.mxu0 %v2332_v41  ;;  %v2398_v41 = vld [vmem:[#allocation2 + $0x3c0] ss:$8 sps:$4 sm:$0xff]  }
  0xf4   :  { %1017 = vmatprep.subr.bf16.mxu0 %v2337_v42  ;;  %v2403_v42 = vld [vmem:[#allocation2 + $0x3d4] ss:$8 sps:$4 sm:$0xff]  }
  0xf7   :  { %1018 = vmatpush1.bf16.msra.mxu0 %v2335_v45  ;;  %v2404_v45 = vld [vmem:[#allocation2 + $0x3e0] ss:$8 sps:$4 sm:$0xff]  }
  0xf8   :  { %1019 = vmatprep.subr.bf16.mxu0 %v2340_v46  ;;  %v2409_v46 = vld [vmem:[#allocation2 + $0x3f4] ss:$8 sps:$4 sm:$0xff]  }
  0xfb   :  { %1020 = vmatpush1.bf16.msra.mxu0 %v2338_v49  ;;  %v127_v49 = vld [vmem:[%s2920_s0 + $0x70] sm:$0xff] }
  0xfc   :  { %1021 = vmatprep.subr.bf16.mxu0 %v2343_v50  ;;  %v135_v50 = vpack.c.bf16 %v127_v49, %v119_v48  ;;  %v2475_v48 = vld [vmem:[#allocation6 + $0x8] sm:$0xff]   ;;  %v2476_v49 = vld [vmem:[#allocation6 + $0x10] sm:$0xff]  }
  0xff   :  { %1022 = vmatpush1.bf16.msra.mxu0 %v2341_v53  ;;  %v2454_v53 = vld [vmem:[#allocation4 + $0xe0] ss:$8 sps:$4 sm:$0xff]  }
 0x100   :  { %1023 = vmatprep.subr.bf16.mxu0 %v2346_v54  ;;  %1328 = vmatpush1.bf16.msra.mxu1 %v2454_v53  ;;  %v2455_v54 = vld [vmem:[#allocation4 + $0xf4] ss:$8 sps:$4 sm:$0xff]  }
 0x101   :  { %1329 = vmatprep.subr.bf16.mxu1 %v2455_v54  ;;  %v2480_v53 = vld [vmem:[#allocation6 + $0x30] sm:$0xff]   ;;  %v2481_v54 = vld [vmem:[#allocation6 + $0x38] sm:$0xff]  }
 0x103   :  { %1024 = vmatpush1.bf16.msra.mxu0 %v2344_v57  ;;  %v267_v57 = vlaneseq }
 0x104   :  { %1025 = vmatprep.subr.bf16.mxu0 %v2349_v58  ;;  %1330 = vmatpush1.bf16.msra.mxu1 %v2457_v55 }
 0x105   :  { %2082 = vmatprep.subr.bf16.mxu1 %v2458_v56  ;;  %v268_v58 = vshrl.u32 %v267_v57, 7  ;;  %v2038_v56 = vld [vmem:[%s2926_s6] ss:$0 sm:$0xff] }
 0x107   :  { %1026 = vmatpush1.bf16.msra.mxu0 %v2347_v61  ;;  %v269_v59 = vsub.s32 0, %v268_v58  ;;  %v273_v61 = vsub.s32 1, %v268_v58 }
 0x108   :  { %1027 = vmatprep.subr.bf16.mxu0 %v2352_v62 }
 0x109   :  { %v270_v62 = vrot.slane %v265_v60, %v269_v59  ;;  %v274_v63 = vrot.slane %v265_v60, %v273_v61 }
 0x10b   :  { %1028 = vmatpush1.bf16.msra.mxu0 %v2350_v1 }
 0x10c   :  { %1029 = vmatprep.subr.bf16.mxu0 %v2355_v2 }
 0x10f   :  { %1030 = vmatpush1.bf16.msra.mxu0 %v2353_v5 }
 0x110   :  { %1031 = vmatprep.subr.bf16.mxu0 %v2358_v6 }
 0x113   :  { %1032 = vmatpush1.bf16.msra.mxu0 %v2356_v7 }
 0x114   :  { %1033 = vmatprep.subr.bf16.mxu0 %v2361_v8 }
 0x117   :  { %1034 = vmatpush1.bf16.msra.mxu0 %v2359_v9 }
 0x118   :  { %1046 = vmatprep.subr.bf16.mxu0 %v2364_v12 }
 0x11a   :  { %1036 = vmatmul.mubr.bf16.vlgmr.msra.gmra.mrb[0].mxu0 %v133_v15  ;;  %v2460_v15 = vld [vmem:[%s2925_s5 + $0x48] sm:$0xff]  }
 0x11b   :  { %1047 = vmatpush1.bf16.msra.mxu0 %v2362_v16  ;;  %1078 = vmatprep.mubr.bf16.mxu0 %v136_v17  ;;  %v2461_v16 = vld [vmem:[%s2925_s5 + $0x8] sm:$0xff]   ;;  %v2462_v17 = vld [vmem:[%s2925_s5 + $0x50] sm:$0xff]  }
 0x11c   :  { %1048 = vmatprep.subr.bf16.mxu0 %v2367_v18  ;;  %v2463_v18 = vld [vmem:[%s2925_s5 + $0x10] sm:$0xff]  }
 0x11f   :  { %1049 = vmatpush1.bf16.msra.mxu0 %v2365_v19  ;;  %v2464_v19 = vld [vmem:[%s2925_s5 + $0x58] sm:$0xff]  }
 0x120   :  { %1050 = vmatprep.subr.bf16.mxu0 %v2370_v20  ;;  %v2465_v20 = vld [vmem:[%s2925_s5 + $0x18] sm:$0xff]  }
 0x123   :  { %1051 = vmatpush1.bf16.msra.mxu0 %v2368_v21  ;;  %v2466_v21 = vld [vmem:[%s2925_s5 + $0x60] sm:$0xff]  }
 0x124   :  { %1052 = vmatprep.subr.bf16.mxu0 %v2373_v22  ;;  %v2467_v22 = vld [vmem:[%s2925_s5 + $0x20] sm:$0xff]  }
 0x127   :  { %1053 = vmatpush1.bf16.msra.mxu0 %v2371_v23  ;;  %v2468_v23 = vld [vmem:[%s2925_s5 + $0x68] sm:$0xff]  }
 0x128   :  { %1054 = vmatprep.subr.bf16.mxu0 %v2376_v24  ;;  %v2469_v24 = vld [vmem:[%s2925_s5 + $0x28] sm:$0xff]  }
 0x12b   :  { %1055 = vmatpush1.bf16.msra.mxu0 %v2374_v25  ;;  %v2470_v25 = vld [vmem:[%s2925_s5 + $0x70] sm:$0xff]  }
 0x12c   :  { %1056 = vmatprep.subr.bf16.mxu0 %v2379_v26  ;;  %v2471_v26 = vld [vmem:[%s2925_s5 + $0x30] sm:$0xff]  }
 0x12f   :  { %1057 = vmatpush1.bf16.msra.mxu0 %v2377_v27  ;;  %v2472_v27 = vld [vmem:[%s2925_s5 + $0x78] sm:$0xff]  }
 0x130   :  { %1058 = vmatprep.subr.bf16.mxu0 %v2382_v28  ;;  %v2473_v28 = vld [vmem:[%s2925_s5 + $0x38] sm:$0xff]  }
 0x133   :  { %1059 = vmatpush1.bf16.msra.mxu0 %v2380_v29  ;;  %v2623_v29 = vmov 0.0  }
 0x134   :  { %1060 = vmatprep.subr.bf16.mxu0 %v2385_v30  ;;  %v1127_v30 = vld [vmem:[%s2924_s4] sm:$0x3] }
 0x137   :  { %1061 = vmatpush1.bf16.msra.mxu0 %v2383_v31  ;;  %v1132_v31 = vrot.slane %v1127_v30, %v269_v59 }
 0x138   :  { %1062 = vmatprep.subr.bf16.mxu0 %v2388_v32  ;;  %v1136_v32 = vrot.slane %v1127_v30, %v273_v61  ;;  %v2064_v30 = vld [vmem:[%s2930_s10] ss:$0 sm:$0xff] }
 0x13b   :  { %1063 = vmatpush1.bf16.msra.mxu0 %v2386_v33 }
 0x13c   :  { %1064 = vmatprep.subr.bf16.mxu0 %v2391_v34 }
 0x13f   :  { %1065 = vmatpush1.bf16.msra.mxu0 %v2389_v35 }
 0x140   :  { %1066 = vmatprep.subr.bf16.mxu0 %v2394_v36 }
 0x143   :  { %1067 = vmatpush1.bf16.msra.mxu0 %v2392_v37 }
 0x144   :  { %1068 = vmatprep.subr.bf16.mxu0 %v2397_v38 }
 0x147   :  { %1069 = vmatpush1.bf16.msra.mxu0 %v2395_v39 }
 0x148   :  { %1070 = vmatprep.subr.bf16.mxu0 %v2400_v40 }
 0x14b   :  { %1071 = vmatpush1.bf16.msra.mxu0 %v2398_v41 }
 0x14c   :  { %1072 = vmatprep.subr.bf16.mxu0 %v2403_v42 }
 0x14f   :  { %1073 = vmatpush1.bf16.msra.mxu0 %v2401_v43 }
 0x150   :  { %1074 = vmatprep.subr.bf16.mxu0 %v2406_v44 }
 0x153   :  { %1075 = vmatpush1.bf16.msra.mxu0 %v2404_v45 }
 0x154   :  { %1076 = vmatprep.subr.bf16.mxu0 %v2409_v46 }
 0x157   :  { %1077 = vmatpush1.bf16.msra.mxu0 %v2407_v47  ;;  %v2474_v47 = vld [vmem:[#allocation6] sm:$0xff]  }
 0x15a   :  { %1079 = vmatmul.mubr.bf16.vlgmr.msra.gmra.mrb[0].mxu0 %v135_v50  ;;  %v2477_v50 = vld [vmem:[#allocation6 + $0x18] sm:$0xff]  }
 0x22d   :  { %v1080_v0 = vpop.f32.mrb[0].mxu0 }
 0x22e   :  { %v2191_v1 = vadd.f32 %v1080_v0, %v270_v62  ;;  %v1082_v2 = vpop.f32.mrb[1].mxu0 }
 0x22f   :  { %v2192_v3 = vadd.f32 %v1082_v2, %v274_v63  ;;  %v1084_v4 = vpop.f32.mrb[2].mxu0  ;;  %v2482_v2 = vld [vmem:[#allocation7] sm:$0xff]  }
 0x230   :  { %v2193_v5 = vadd.f32 %v1084_v4, %v270_v62  ;;  %v1086_v6 = vpop.f32.mrb[3].mxu0  ;;  %v1089_v8 = vmax.f32 %v2191_v1, 0.0  ;;  %v2483_v4 = vld [vmem:[#allocation7 + $0x8] sm:$0xff]  }
 0x231   :  { %v2194_v7 = vadd.f32 %v1086_v6, %v274_v63  ;;  %v1090_v10 = vmax.f32 %v2192_v3, 0.0  ;;  %v2485_v6 = vld [vmem:[#allocation7 + $0x18] sm:$0xff]  }
 0x232   :  { %v1091_v9 = vmax.f32 %v2193_v5, 0.0  ;;  %v2484_v5 = vld [vmem:[#allocation7 + $0x10] sm:$0xff]  }
 0x233   :  { %v1092_v11 = vmax.f32 %v2194_v7, 0.0  ;;  %v2486_v7 = vld [vmem:[#allocation7 + $0x20] sm:$0xff]  }
 0x234   :  { %v1093_v12 = vpack.c.bf16 %v1091_v9, %v1089_v8  ;;  %v2487_v8 = vld [vmem:[#allocation7 + $0x28] sm:$0xff]   ;;  %v2488_v9 = vld [vmem:[#allocation7 + $0x30] sm:$0xff]  }
 0x235   :  { %v1094_v13 = vpack.c.bf16 %v1092_v11, %v1090_v10  ;;  %v2489_v10 = vld [vmem:[#allocation7 + $0x38] sm:$0xff]   ;;  %v2055_v11 = vld [vmem:[%s2928_s8] ss:$0 sm:$0xff] }
 0x237   :  { %1331 = vmatprep.mubr.bf16.mxu1 %v1094_v13 }
 0x238   :  { %1332 = vmatmul.mubr.bf16.vlgmr.msra.gmra.mrb[0].mxu1 %v1093_v12 }
 0x239   :  { %2083 = vmatpush3.bf16.msra.mxu1 %v2459_v14 }
 0x23a   :  { %2084 = vmatprep.subr.bf16.mxu1 %v2460_v15 }
 0x23d   :  { %2085 = vmatpush3.bf16.msra.mxu1 %v2461_v16 }
 0x23e   :  { %2086 = vmatprep.subr.bf16.mxu1 %v2462_v17 }
 0x241   :  { %2087 = vmatpush3.bf16.msra.mxu1 %v2463_v18 }
 0x242   :  { %2088 = vmatprep.subr.bf16.mxu1 %v2464_v19 }
 0x245   :  { %2089 = vmatpush3.bf16.msra.mxu1 %v2465_v20  ;;  %v2490_v20 = vld [vmem:[#allocation9] sm:$0xff]  }
 0x246   :  { %2090 = vmatprep.subr.bf16.mxu1 %v2466_v21 }
 0x249   :  { %2091 = vmatpush3.bf16.msra.mxu1 %v2467_v22  ;;  %v2491_v22 = vld [vmem:[#allocation9 + $0x8] sm:$0xff]  }
 0x24a   :  { %2092 = vmatprep.subr.bf16.mxu1 %v2468_v23  ;;  %v2492_v23 = vld [vmem:[#allocation9 + $0x10] sm:$0xff]  }
 0x24d   :  { %2093 = vmatpush3.bf16.msra.mxu1 %v2469_v24  ;;  %v2493_v24 = vld [vmem:[#allocation9 + $0x18] sm:$0xff]  }
 0x24e   :  { %2094 = vmatprep.subr.bf16.mxu1 %v2470_v25  ;;  %v2494_v25 = vld [vmem:[#allocation9 + $0x20] sm:$0xff]  }
 0x251   :  { %2095 = vmatpush3.bf16.msra.mxu1 %v2471_v26  ;;  %v2495_v26 = vld [vmem:[#allocation9 + $0x28] sm:$0xff]  }
 0x252   :  { %2096 = vmatprep.subr.bf16.mxu1 %v2472_v27  ;;  %v2496_v27 = vld [vmem:[#allocation9 + $0x30] sm:$0xff]  }
 0x255   :  { %2097 = vmatpush3.bf16.msra.mxu1 %v2473_v28  ;;  %v2497_v28 = vld [vmem:[#allocation9 + $0x38] sm:$0xff]  }
 0x256   :  { %2131 = vmatprep.subr.bf16.mxu1 %v2623_v29 }
 0x30b   :  { %v1333_v33 = vpop.f32.mrb[0].mxu1 }
 0x30c   :  { %v1334_v34 = vadd.f32 %v1333_v33, %v1132_v31  ;;  %v1335_v35 = vpop.f32.mrb[1].mxu1 }
 0x30d   :  { %v1336_v36 = vadd.f32 %v1335_v35, %v1136_v32  ;;  %v1337_v37 = vpop.f32.mrb[2].mxu1 }
 0x30e   :  { %v1338_v38 = vadd.f32 %v1337_v37, %v1132_v31  ;;  %v1339_v39 = vpop.f32.mrb[3].mxu1  ;;  %v1342_v41 = vmax.f32 %v1334_v34, 0.0 }
 0x30f   :  { %v1340_v40 = vadd.f32 %v1339_v39, %v1136_v32  ;;  %v1343_v43 = vmax.f32 %v1336_v36, 0.0 }
 0x310   :  { %v1344_v42 = vmax.f32 %v1338_v38, 0.0 }
 0x311   :  { %v1345_v44 = vmax.f32 %v1340_v40, 0.0 }
 0x312   :  { %v1346_v45 = vpack.c.bf16 %v1344_v42, %v1342_v41 }
 0x313   :  { %v1347_v46 = vpack.c.bf16 %v1345_v44, %v1343_v43 }
 0x315   :  { %1515 = vmatprep.mubr.bf16.mxu1 %v1347_v46 }
 0x316   :  { %1516 = vmatmul.mubr.bf16.vlgmr.msra.gmra.mrb[4].mxu1 %v1346_v45 }
 0x317   :  { %2132 = vmatpush3.bf16.msra.mxu1 %v2474_v47  ;;  %2147 = vmatprep.mubr.msk.bf16.mxu1 %vm2624_vm0, %v2623_v29 }
 0x318   :  { %2133 = vmatprep.subr.bf16.mxu1 %v2623_v29 }
 0x31b   :  { %2134 = vmatpush3.bf16.msra.mxu1 %v2475_v48 }
 0x31c   :  { %2135 = vmatprep.subr.bf16.mxu1 %v2623_v29 }
 0x31f   :  { %2136 = vmatpush3.bf16.msra.mxu1 %v2476_v49 }
 0x320   :  { %2137 = vmatprep.subr.bf16.mxu1 %v2623_v29 }
 0x323   :  { %2138 = vmatpush3.bf16.msra.mxu1 %v2477_v50 }
 0x324   :  { %2139 = vmatprep.subr.bf16.mxu1 %v2623_v29 }
 0x327   :  { %2140 = vmatpush3.bf16.msra.mxu1 %v2478_v51 }
 0x328   :  { %2141 = vmatprep.subr.bf16.mxu1 %v2623_v29 }
 0x32b   :  { %2142 = vmatpush3.bf16.msra.mxu1 %v2479_v52 }
 0x32c   :  { %2143 = vmatprep.subr.bf16.mxu1 %v2623_v29 }
 0x32f   :  { %2144 = vmatpush3.bf16.msra.mxu1 %v2480_v53 }
 0x330   :  { %2145 = vmatprep.subr.bf16.mxu1 %v2623_v29 }
 0x333   :  { %2146 = vmatpush3.bf16.msra.mxu1 %v2481_v54 }
 0x334   :  { %2151 = vmatprep.subr.bf16.mxu1 %v2623_v29 }
 0x3e9   :  { %v2098_v55 = vpop.f32.mrb[4].mxu1 }
 0x3ea   :  { %v2099_v57 = vpop.f32.mrb[5].mxu1 }
 0x3eb   :  { %v2100_v58 = vadd.f32 %v2099_v57, %v2098_v55  ;;  %v2101_v59 = vpop.f32.mrb[6].mxu1 }
 0x3ec   :  { %v2102_v60 = vpop.f32.mrb[7].mxu1 }
 0x3ed   :  { %v1518_v61 = vadd.f32 %v2100_v58, %v2038_v56  ;;  %v2103_v62 = vadd.f32 %v2102_v60, %v2101_v59 }
 0x3ef   :  { %v1521_v63 = vadd.f32 %v2103_v62, %v2038_v56  ;;  %v1524_v0 = vmax.f32 %v1518_v61, 0.0 }
 0x3f1   :  { %v1525_v1 = vmax.f32 %v1521_v63, 0.0 }
 0x3f3   :  { %v1526_v3 = vpack.c.bf16 %v1525_v1, %v1524_v0 }
 0x3f5   :  { %2148 = vmatmul.mubr.bf16.vlgmr.msra.gmra.mrb[8].mxu1 %v1526_v3 }
 0x3f6   :  { %2152 = vmatpush3.bf16.msra.mxu1 %v2482_v2  ;;  %2167 = vmatprep.mubr.msk.bf16.mxu1 %vm2624_vm0, %v2623_v29 }
 0x3f7   :  { %2153 = vmatprep.subr.bf16.mxu1 %v2623_v29 }
 0x3fa   :  { %2154 = vmatpush3.bf16.msra.mxu1 %v2483_v4 }
 0x3fb   :  { %2155 = vmatprep.subr.bf16.mxu1 %v2623_v29 }
 0x3fe   :  { %2156 = vmatpush3.bf16.msra.mxu1 %v2484_v5 }
 0x3ff   :  { %2157 = vmatprep.subr.bf16.mxu1 %v2623_v29 }
 0x402   :  { %2158 = vmatpush3.bf16.msra.mxu1 %v2485_v6 }
 0x403   :  { %2159 = vmatprep.subr.bf16.mxu1 %v2623_v29 }
 0x406   :  { %2160 = vmatpush3.bf16.msra.mxu1 %v2486_v7 }
 0x407   :  { %2161 = vmatprep.subr.bf16.mxu1 %v2623_v29 }
 0x40a   :  { %2162 = vmatpush3.bf16.msra.mxu1 %v2487_v8 }
 0x40b   :  { %2163 = vmatprep.subr.bf16.mxu1 %v2623_v29 }
 0x40e   :  { %2164 = vmatpush3.bf16.msra.mxu1 %v2488_v9 }
 0x40f   :  { %2165 = vmatprep.subr.bf16.mxu1 %v2623_v29 }
 0x412   :  { %2166 = vmatpush3.bf16.msra.mxu1 %v2489_v10 }
 0x413   :  { %2171 = vmatprep.subr.bf16.mxu1 %v2623_v29 }
 0x4c8   :  { %v1632_v12 = vpop.f32.mrb[8].mxu1 }
 0x4c9   :  { %v1633_v13 = vadd.f32 %v2055_v11, %v1632_v12  ;;  %v2149_v14 = vpop.f32.mrb[9].mxu1 }
 0x4ca   :  { %v1635_v15 = vpop.f32.mrb[10].mxu1 }
 0x4cb   :  { %v1636_v16 = vadd.f32 %v2055_v11, %v1635_v15  ;;  %v2150_v17 = vpop.f32.mrb[11].mxu1  ;;  %v1639_v18 = vmax.f32 %v1633_v13, 0.0 }
 0x4cd   :  { %v1640_v19 = vmax.f32 %v1636_v16, 0.0 }
 0x4cf   :  { %v1641_v21 = vpack.c.bf16 %v1640_v19, %v1639_v18 }
 0x4d1   :  { %2168 = vmatmul.mubr.bf16.vlgmr.msra.gmra.mrb[12].mxu1 %v1641_v21 }
 0x4d2   :  { %2172 = vmatpush3.bf16.msra.mxu1 %v2490_v20  ;;  %2187 = vmatprep.mubr.msk.bf16.mxu1 %vm2624_vm0, %v2623_v29 }
 0x4d3   :  { %2173 = vmatprep.subr.bf16.mxu1 %v2623_v29 }
 0x4d6   :  { %2174 = vmatpush3.bf16.msra.mxu1 %v2491_v22 }
 0x4d7   :  { %2175 = vmatprep.subr.bf16.mxu1 %v2623_v29 }
 0x4da   :  { %2176 = vmatpush3.bf16.msra.mxu1 %v2492_v23 }
 0x4db   :  { %2177 = vmatprep.subr.bf16.mxu1 %v2623_v29 }
 0x4de   :  { %2178 = vmatpush3.bf16.msra.mxu1 %v2493_v24 }
 0x4df   :  { %2179 = vmatprep.subr.bf16.mxu1 %v2623_v29 }
 0x4e2   :  { %2180 = vmatpush3.bf16.msra.mxu1 %v2494_v25 }
 0x4e3   :  { %2181 = vmatprep.subr.bf16.mxu1 %v2623_v29 }
 0x4e6   :  { %2182 = vmatpush3.bf16.msra.mxu1 %v2495_v26 }
 0x4e7   :  { %2183 = vmatprep.subr.bf16.mxu1 %v2623_v29 }
 0x4ea   :  { %2184 = vmatpush3.bf16.msra.mxu1 %v2496_v27 }
 0x4eb   :  { %2185 = vmatprep.subr.bf16.mxu1 %v2623_v29  ;;  %v2073_v29 = vld [vmem:[%s2932_s12] ss:$0 sm:$0xff] }
 0x4ee   :  { %2186 = vmatpush3.bf16.msra.mxu1 %v2497_v28 }
 0x5a4   :  { %v1747_v31 = vpop.f32.mrb[12].mxu1 }
 0x5a5   :  { %v1748_v32 = vadd.f32 %v2064_v30, %v1747_v31  ;;  %v2169_v33 = vpop.f32.mrb[13].mxu1 }
 0x5a6   :  { %v1750_v34 = vpop.f32.mrb[14].mxu1 }
 0x5a7   :  { %v1751_v35 = vadd.f32 %v2064_v30, %v1750_v34  ;;  %v2170_v36 = vpop.f32.mrb[15].mxu1  ;;  %v1754_v37 = vmax.f32 %v1748_v32, 0.0 }
 0x5a9   :  { %v1755_v38 = vmax.f32 %v1751_v35, 0.0 }
 0x5ab   :  { %v1756_v39 = vpack.c.bf16 %v1755_v38, %v1754_v37 }
 0x5ad   :  { %2188 = vmatmul.mubr.bf16.vlgmr.msra.gmra.mrb[16].mxu1 %v1756_v39 }
 0x680   :  { %v1862_v40 = vpop.f32.mrb[16].mxu1 }
 0x681   :  { %v1863_v41 = vadd.f32 %v2073_v29, %v1862_v40  ;;  %v2189_v42 = vpop.f32.mrb[17].mxu1 }
 0x682   :  { %v1865_v43 = vpop.f32.mrb[18].mxu1 }
 0x683   :  { %1869 = vst [vmem:[%s2933_s13] sm:$0xff] %v1863_v41  ;;  %v1866_v44 = vadd.f32 %v2073_v29, %v1865_v43  ;;  %v2190_v45 = vpop.f32.mrb[19].mxu1 }
 0x685   :  { %1870 = vst [vmem:[%s2933_s13 + $0x8] sm:$0xff] %v1866_v44 }
 0x686   :  { %1875 = vsyncpa [#allocation3], 1 }
 0x687   :  { %1876 = vsyncpa [#allocation5], 1 }
 0x688   :  { %1877 = vsyncpa [#allocation8], 1 }

</bundles_post_ra>
